<compile_context>
chip_gen: v6e
topology: v6e:2x2x1
jax: 0.10.0
libtpu: 0.0.40
codegen_flags: <defaults>
</compile_context>

<pallas_src>
import functools

import jax
import jax.numpy as jnp
from jax import lax
from jax.experimental import pallas as pl
from jax.experimental.pallas import tpu as pltpu

_EPS = 1e-5  # PyTorch LayerNorm default eps


def _layernorm_store(y, gamma, beta, o_ref):
    """Single-pass LayerNorm over the lane axis; y, gamma, beta are f32."""
    mean = jnp.mean(y, axis=-1, keepdims=True)
    mean_sq = jnp.mean(y * y, axis=-1, keepdims=True)
    var = jnp.maximum(mean_sq - mean * mean, 0.0)      # guard tiny negatives
    out = (y - mean) * lax.rsqrt(var + _EPS)
    o_ref[...] = (out * gamma + beta).astype(o_ref.dtype)


def _kernel_eval(x_ref, fx_ref, g_ref, b_ref, o_ref):
    y = x_ref[...].astype(jnp.float32) + fx_ref[...].astype(jnp.float32)
    _layernorm_store(y, g_ref[...], b_ref[...], o_ref)


def _kernel_train_hw(seed_ref, x_ref, fx_ref, g_ref, b_ref, o_ref, *, dropout_p):
    """Training path using the on-chip hardware PRNG (real TPU backend only)."""
    fx = fx_ref[...].astype(jnp.float32)
    pltpu.prng_seed(seed_ref[0] + pl.program_id(0))     # decorrelate per block
    bits = pltpu.prng_random_bits(fx.shape)
    if bits.dtype != jnp.uint32:
        bits = pltpu.bitcast(bits, jnp.uint32)
    threshold = jnp.uint32(min(int(dropout_p * 4294967296.0), 4294967295))
    scale = jnp.float32(1.0 / (1.0 - dropout_p))        # baked at trace time
    fx = jnp.where(bits >= threshold, fx * scale, jnp.float32(0.0))
    # TODO(synk): mask is distributionally equivalent to torch.nn.Dropout but
    # not bit-identical to torch's RNG.
    y = x_ref[...].astype(jnp.float32) + fx
    _layernorm_store(y, g_ref[...], b_ref[...], o_ref)


def _kernel_train_bits(x_ref, fx_ref, bits_ref, g_ref, b_ref, o_ref, *, dropout_p):
    """Training path consuming precomputed uint32 random bits (fallback path
    for non-TPU backends / interpret mode where prng_seed cannot lower)."""
    fx = fx_ref[...].astype(jnp.float32)
    bits = bits_ref[...]
    threshold = jnp.uint32(min(int(dropout_p * 4294967296.0), 4294967295))
    scale = jnp.float32(1.0 / (1.0 - dropout_p))
    fx = jnp.where(bits >= threshold, fx * scale, jnp.float32(0.0))
    y = x_ref[...].astype(jnp.float32) + fx
    _layernorm_store(y, g_ref[...], b_ref[...], o_ref)


def _pick_block_rows(rows, D, itemsize, vmem_cap, *, extra_io_bytes=0, n_f32_temps=3):
    """Bytes-based row-block: >= ~12 MiB of HBM traffic per step, within VMEM."""
    TARGET_STEP_BYTES = 12 << 20
    sub = 8 if itemsize >= 4 else (16 if itemsize == 2 else 32)  # sublane packing
    hbm_per_row = D * (3 * itemsize + extra_io_bytes)            # x, f_x, out (+bits)
    # VMEM per row: double-buffered I/O tiles + single-buffered f32 temporaries.
    vmem_per_row = 2 * hbm_per_row + n_f32_temps * D * 4
    budget = (vmem_cap * 5) // 8
    br_vmem = max(1, budget // vmem_per_row)
    br_target = pl.cdiv(TARGET_STEP_BYTES, hbm_per_row)
    br = max(1, min(br_vmem, br_target))
    br = min(br, pl.cdiv(rows, sub) * sub)     # don't over-allocate tiny inputs
    br = max(sub, (br // sub) * sub)
    return int(br)


def residual_layer_norm(x, f_x, mask, gamma, beta, *,
                        dropout=0.1, training=False, seed=0, block_rows=None):
    """Pallas implementation of ResidualLayerNorm.forward((x, f_x, mask))."""
    S, B, D = x.shape
    rows = S * B
    itemsize = jnp.dtype(x.dtype).itemsize

    dropout = float(dropout)
    use_dropout = bool(training) and dropout > 0.0
    if use_dropout and dropout >= 1.0:
        # torch.nn.Dropout(p=1.0) zeroes its input -> out = LayerNorm(x).
        f_x = jnp.zeros_like(f_x)
        use_dropout = False

    # On-chip PRNG only lowers on a real TPU backend; otherwise stream bits in.
    use_hw_prng = use_dropout and jax.default_backend() == "tpu"

    try:
        vmem_cap = int(pltpu.get_tpu_info().vmem_capacity_bytes)
    except Exception:
        vmem_cap = 64 << 20          # conservative fallback (v7x per-TC VMEM)

    extra_io = 4 if (use_dropout and not use_hw_prng) else 0   # uint32 bits input
    n_temps = 5 if use_dropout else 3                          # in-kernel f32 temps
    if block_rows is None:
        block_rows = _pick_block_rows(rows, D, itemsize, vmem_cap,
                                      extra_io_bytes=extra_io, n_f32_temps=n_temps)

    x2 = x.reshape(rows, D)
    fx2 = f_x.reshape(rows, D)
    g2 = gamma.reshape(1, D).astype(jnp.float32)   # pre-cast once; constant block
    b2 = beta.reshape(1, D).astype(jnp.float32)

    grid = (pl.cdiv(rows, block_rows),)            # ragged last block is masked

    # Scoped-VMEM need, matching the chosen path (train vs eval).
    tile_elems = block_rows * D
    need = (2 * 3 * tile_elems * itemsize              # x, f_x, out double-buffered
            + (2 * tile_elems * 4 if extra_io else 0)  # uint32 bits input (fallback)
            + n_temps * tile_elems * 4                 # f32 temporaries
            + 2 * 2 * D * 4                            # gamma / beta
            + max(4 << 20, tile_elems * itemsize))     # headroom scales with tile
    vmem_limit = int(min(max(need, 32 << 20), (vmem_cap * 3) // 4))
    vmem_limit = int(max(vmem_limit, need))

    compiler_params = pltpu.CompilerParams(
        dimension_semantics=("parallel",),
        vmem_limit_bytes=vmem_limit)
    # TODO(synk): on v7x verify that "parallel" actually shards this axis across
    # both TensorCores; if not, switch to pltpu.CORE_PARALLEL for ~2x on this
    # mem-bound kernel (no-op on v5e/v6e).

    out_shape = jax.ShapeDtypeStruct((rows, D), x.dtype)

    if use_dropout and use_hw_prng:
        kernel = functools.partial(_kernel_train_hw, dropout_p=dropout)
        grid_spec = pltpu.PrefetchScalarGridSpec(
            num_scalar_prefetch=1,                     # RNG seed in SMEM
            grid=grid,
            in_specs=[
                pl.BlockSpec((block_rows, D), lambda i, s: (i, 0)),  # x
                pl.BlockSpec((block_rows, D), lambda i, s: (i, 0)),  # f_x
                pl.BlockSpec((1, D),          lambda i, s: (0, 0)),  # gamma
                pl.BlockSpec((1, D),          lambda i, s: (0, 0)),  # beta
            ],
            out_specs=pl.BlockSpec((block_rows, D), lambda i, s: (i, 0)),
        )
        seed_arr = jnp.asarray([seed], dtype=jnp.int32)
        out = pl.pallas_call(
            kernel, out_shape=out_shape, grid_spec=grid_spec,
            compiler_params=compiler_params,
        )(seed_arr, x2, fx2, g2, b2)
    elif use_dropout:
        bits = jax.random.bits(jax.random.PRNGKey(int(seed)), (rows, D),
                               dtype=jnp.uint32)
        kernel = functools.partial(_kernel_train_bits, dropout_p=dropout)
        grid_spec = pltpu.PrefetchScalarGridSpec(
            num_scalar_prefetch=0,
            grid=grid,
            in_specs=[
                pl.BlockSpec((block_rows, D), lambda i: (i, 0)),  # x
                pl.BlockSpec((block_rows, D), lambda i: (i, 0)),  # f_x
                pl.BlockSpec((block_rows, D), lambda i: (i, 0)),  # random bits
                pl.BlockSpec((1, D),          lambda i: (0, 0)),  # gamma
                pl.BlockSpec((1, D),          lambda i: (0, 0)),  # beta
            ],
            out_specs=pl.BlockSpec((block_rows, D), lambda i: (i, 0)),
        )
        out = pl.pallas_call(
            kernel, out_shape=out_shape, grid_spec=grid_spec,
            compiler_params=compiler_params,
        )(x2, fx2, bits, g2, b2)
    else:
        grid_spec = pltpu.PrefetchScalarGridSpec(
            num_scalar_prefetch=0,
            grid=grid,
            in_specs=[
                pl.BlockSpec((block_rows, D), lambda i: (i, 0)),  # x
                pl.BlockSpec((block_rows, D), lambda i: (i, 0)),  # f_x
                pl.BlockSpec((1, D),          lambda i: (0, 0)),  # gamma
                pl.BlockSpec((1, D),          lambda i: (0, 0)),  # beta
            ],
            out_specs=pl.BlockSpec((block_rows, D), lambda i: (i, 0)),
        )
        out = pl.pallas_call(
            _kernel_eval, out_shape=out_shape, grid_spec=grid_spec,
            compiler_params=compiler_params,
        )(x2, fx2, g2, b2)

    return out.reshape(S, B, D), mask


if __name__ == "__main__":
    key = jax.random.PRNGKey(0)
    # model_dim=128 keeps the output lane-dense (full 128-lane vregs, unmasked
    # vector stores); arbitrary D still works since the block spans the full
    # last dim.
    seq, batch, model_dim = 8, 2, 128

    k_x, k_f, k_m = jax.random.split(key, 3)
    x = jax.random.normal(k_x, (seq, batch, model_dim), dtype=jnp.float32)
    f_x = jax.random.normal(k_f, (seq, batch, model_dim), dtype=jnp.float32)
    mask = (jax.random.uniform(k_m, (batch, seq)) > 0.2)

    # LayerNorm affine params, PyTorch-style init (gamma=1, beta=0).
    gamma = jnp.ones((model_dim,), dtype=jnp.float32)
    beta = jnp.zeros((model_dim,), dtype=jnp.float32)

    # Eval-mode forward (dropout is identity) -> fully deterministic.
    out, out_mask = residual_layer_norm(x, f_x, mask, gamma, beta,
                                        dropout=0.1, training=False)
    out = jax.block_until_ready(out)

    # Pure-JAX reference for a sanity check.
    y = x + f_x
    mu = jnp.mean(y, axis=-1, keepdims=True)
    var = jnp.mean((y - mu) ** 2, axis=-1, keepdims=True)
    ref = (y - mu) * lax.rsqrt(var + _EPS) * gamma + beta
    assert jnp.allclose(out, ref, atol=1e-4, rtol=1e-4)
    assert bool(jnp.all(out_mask == mask))

    # Exercise the training/dropout path once (hardware PRNG on TPU, host bits
    # otherwise); check it runs and stays finite.
    out_tr, _ = residual_layer_norm(x, f_x, mask, gamma, beta,
                                    dropout=0.1, training=True, seed=1234)
    out_tr = jax.block_until_ready(out_tr)
    assert out_tr.shape == x.shape
    assert bool(jnp.all(jnp.isfinite(out_tr)))

    print("KERNEL_OK")
</pallas_src>

<mosaic_0001>
module attributes {stable_mosaic.version = 11 : i64} {
  func.func @_kernel_eval(%arg0: i32, %arg1: memref<16x128xf32, #tpu.memory_space<vmem>>, %arg2: memref<16x128xf32, #tpu.memory_space<vmem>>, %arg3: memref<1x128xf32, #tpu.memory_space<vmem>>, %arg4: memref<1x128xf32, #tpu.memory_space<vmem>>, %arg5: memref<16x128xf32, #tpu.memory_space<vmem>>) attributes {dimension_semantics = [#tpu.dimension_semantics<parallel>], iteration_bounds = array<i64: 1>, scalar_prefetch = 0 : i64, scratch_operands = 0 : i64, tpu.core_type = #tpu.core_type<tc>, window_params = [{transform_indices = @transform_0, window_bounds = array<i64: 16, 128>}, {transform_indices = @transform_1, window_bounds = array<i64: 16, 128>}, {pipeline_mode = #tpu.pipeline_mode<synchronous>, transform_indices = @transform_2, window_bounds = array<i64: 1, 128>}, {pipeline_mode = #tpu.pipeline_mode<synchronous>, transform_indices = @transform_3, window_bounds = array<i64: 1, 128>}, {transform_indices = @transform_4, window_bounds = array<i64: 16, 128>}]} {
    %c0 = arith.constant 0 : index
    %c0_0 = arith.constant 0 : index
    %0 = vector.load %arg1[%c0, %c0_0] : memref<16x128xf32, #tpu.memory_space<vmem>>, vector<16x128xf32>
    %c0_1 = arith.constant 0 : index
    %c0_2 = arith.constant 0 : index
    %1 = vector.load %arg2[%c0_1, %c0_2] : memref<16x128xf32, #tpu.memory_space<vmem>>, vector<16x128xf32>
    %2 = arith.addf %0, %1 : vector<16x128xf32>
    %c0_3 = arith.constant 0 : index
    %c0_4 = arith.constant 0 : index
    %3 = vector.load %arg3[%c0_3, %c0_4] : memref<1x128xf32, #tpu.memory_space<vmem>>, vector<1x128xf32>
    %c0_5 = arith.constant 0 : index
    %c0_6 = arith.constant 0 : index
    %4 = vector.load %arg4[%c0_5, %c0_6] : memref<1x128xf32, #tpu.memory_space<vmem>>, vector<1x128xf32>
    %cst = arith.constant dense<0.000000e+00> : vector<16xf32>
    %5 = vector.multi_reduction <add>, %2, %cst [1] : vector<16x128xf32> to vector<16xf32>
    %6 = vector.shape_cast %5 : vector<16xf32> to vector<16x1xf32>
    %cst_7 = arith.constant 1.280000e+02 : f32
    %7 = vector.broadcast %cst_7 : f32 to vector<16x1xf32>
    %8 = arith.divf %6, %7 : vector<16x1xf32>
    %9 = arith.mulf %2, %2 : vector<16x128xf32>
    %cst_8 = arith.constant dense<0.000000e+00> : vector<16xf32>
    %10 = vector.multi_reduction <add>, %9, %cst_8 [1] : vector<16x128xf32> to vector<16xf32>
    %11 = vector.shape_cast %10 : vector<16xf32> to vector<16x1xf32>
    %cst_9 = arith.constant 1.280000e+02 : f32
    %12 = vector.broadcast %cst_9 : f32 to vector<16x1xf32>
    %13 = arith.divf %11, %12 : vector<16x1xf32>
    %14 = arith.mulf %8, %8 : vector<16x1xf32>
    %15 = arith.subf %13, %14 : vector<16x1xf32>
    %cst_10 = arith.constant 0.000000e+00 : f32
    %16 = vector.broadcast %cst_10 : f32 to vector<16x1xf32>
    %17 = arith.maximumf %15, %16 : vector<16x1xf32>
    %18 = vector.broadcast %8 : vector<16x1xf32> to vector<16x128xf32>
    %19 = arith.subf %2, %18 : vector<16x128xf32>
    %cst_11 = arith.constant 9.99999974E-6 : f32
    %20 = vector.broadcast %cst_11 : f32 to vector<16x1xf32>
    %21 = arith.addf %17, %20 : vector<16x1xf32>
    %22 = math.rsqrt %21 : vector<16x1xf32>
    %23 = vector.broadcast %22 : vector<16x1xf32> to vector<16x128xf32>
    %24 = arith.mulf %19, %23 : vector<16x128xf32>
    %25 = vector.broadcast %3 : vector<1x128xf32> to vector<16x128xf32>
    %26 = arith.mulf %24, %25 : vector<16x128xf32>
    %27 = vector.broadcast %4 : vector<1x128xf32> to vector<16x128xf32>
    %28 = arith.addf %26, %27 : vector<16x128xf32>
    %c0_12 = arith.constant 0 : index
    %c0_13 = arith.constant 0 : index
    %29 = vector.load %arg5[%c0_12, %c0_13] : memref<16x128xf32, #tpu.memory_space<vmem>>, vector<16x128xf32>
    tpu.vector_store %arg5[%c0_12, %c0_13], %28 {strides = array<i32>} : memref<16x128xf32, #tpu.memory_space<vmem>>, vector<16x128xf32>,
    return
  }
  func.func @transform_0(%arg0: i32) -> (i32, i32) {
    %c0_i32 = arith.constant 0 : i32
    %c0_i32_0 = arith.constant 0 : i32
    return %arg0, %c0_i32 : i32, i32
  }
  func.func @transform_1(%arg0: i32) -> (i32, i32) {
    %c0_i32 = arith.constant 0 : i32
    %c0_i32_0 = arith.constant 0 : i32
    return %arg0, %c0_i32 : i32, i32
  }
  func.func @transform_2(%arg0: i32) -> (i32, i32) {
    %c0_i32 = arith.constant 0 : i32
    %c0_i32_0 = arith.constant 0 : i32
    %c0_i32_1 = arith.constant 0 : i32
    return %c0_i32, %c0_i32_0 : i32, i32
  }
  func.func @transform_3(%arg0: i32) -> (i32, i32) {
    %c0_i32 = arith.constant 0 : i32
    %c0_i32_0 = arith.constant 0 : i32
    %c0_i32_1 = arith.constant 0 : i32
    return %c0_i32, %c0_i32_0 : i32, i32
  }
  func.func @transform_4(%arg0: i32) -> (i32, i32) {
    %c0_i32 = arith.constant 0 : i32
    %c0_i32_0 = arith.constant 0 : i32
    return %arg0, %c0_i32 : i32, i32
  }
}

</mosaic_0001>

<bundles_post_ra>
// kernel: tpu_custom_call.1
= control target key start
LH: loop header
LB: loop body
LE: loop exit
PB: predicated region body
PF: predicated region fallthrough
CT: control target
= control target key end

     0   :  { %9 = vsyncpa [#allocation3], 0  ;;  %s250_s0 = inlined_call_operand.hbm [shape: f32[16,128], index: 0, kind: input, shape index: {}]   ;;  %s251_s1 = inlined_call_operand.hbm [shape: f32[16,128], index: 1, kind: input, shape index: {}]   ;;  %s252_s2 = inlined_call_operand.vmem [shape: f32[1,128], index: 2, kind: input, shape index: {}]   ;;  %s253_s3 = inlined_call_operand.vmem [shape: f32[1,128], index: 3, kind: input, shape index: {}]   ;;  %s254_s4 = inlined_call_operand.hbm [shape: f32[16,128], index: 4, kind: output, shape index: {}]  }
   0x1   :  { %10 = vsyncpa [#allocation6], 0 }
   0x2   :  { %11 = vsyncpa [#allocation4], 0  ;;  %s196_s15 = smov [#allocation2]  }
   0x3   :  { %s17_s16 = sshll.u32 %s196_s15, 4  ;;  %s18_s16 = int_to_ptr.vmem [resolvable:$true] %s17_s16 }
   0x4   :  { %s138_s17 = scalar_lea.vmem %s18_s16, 256  ;;  %p143_p1 = scmp.lt.s32.totalorder %s18_s16, %s18_s16 }
   0x5   :  { %p139_p0 = scmp.ne.s32.totalorder %s18_s16, %s138_s17  ;;  %p144_p2 = scmp.lt.s32.totalorder %s138_s17, %s138_s17 }
   0x7   :  { %p145_p3 = por %p144_p2, %p143_p1 }
   0x9   :  { %p146_p4 = pnand %p145_p3, %p139_p0 }
   0xb   :  { %149 = shalt.err (!%p146_p4)
}
   0xc   :  { %s197_s18 = smov 128   ;;  %s198_s19 = smov 8  }
   0xd   :  { %23 = dma.hbm_to_vmem [thread:$0]  %s250_s0, 256, %s18_s16, [#allocation3], %s197_s18, %s197_s18, %s198_s19  }
   0xe   :  { %s199_s22 = smov [#allocation5]  }
   0xf   :  { %s29_s23 = sshll.u32 %s199_s22, 4  ;;  %s30_s23 = int_to_ptr.vmem [resolvable:$true] %s29_s23 }
  0x10   :  { %s158_s24 = scalar_lea.vmem %s30_s23, 256  ;;  %p163_p6 = scmp.lt.s32.totalorder %s30_s23, %s30_s23 }
  0x11   :  { %p159_p5 = scmp.ne.s32.totalorder %s30_s23, %s158_s24  ;;  %p164_p7 = scmp.lt.s32.totalorder %s158_s24, %s158_s24 }
  0x13   :  { %p165_p8 = por %p164_p7, %p163_p6 }
  0x15   :  { %p166_p9 = pnand %p165_p8, %p159_p5 }
  0x17   :  { %169 = shalt.err (!%p166_p9)
}
  0x18   :  { %35 = dma.hbm_to_vmem [thread:$0]  %s251_s1, 256, %s30_s23, [#allocation6], %s197_s18, %s197_s18, %s198_s19  }
  0x19   :  { %190 = dma.done.wait [#allocation3], 256  }
  0x1a   :  { %191 = vsyncadd [#allocation3], 4294967040 }
  0x1b   :  { %192 = dma.done.wait [#allocation6], 256  }
  0x1c   :  { %193 = vsyncadd [#allocation6], 4294967040  ;;  %v46_v0 = vld [vmem:[#allocation2] sm:$0xff]  ;;  %v48_v1 = vld [vmem:[#allocation5] sm:$0xff]  ;;  %s200_s29 = smov [#allocation7]  }
  0x1d   :  { %v47_v2 = vld [vmem:[#allocation2 + $0x8] sm:$0xff]  ;;  %v50_v3 = vadd.f32 %v48_v1, %v46_v0  ;;  %v49_v4 = vld [vmem:[#allocation5 + $0x8] sm:$0xff]  ;;  %v119_v26 = vld [vmem:[%s252_s2] ss:$0 sm:$0xff]  ;;  %s106_s30 = sshll.u32 %s200_s29, 4  ;;  %s107_s30 = int_to_ptr.vmem [resolvable:$true] %s106_s30 }
  0x1e   :  { %v51_v5 = vadd.f32 %v49_v4, %v47_v2  ;;  %v120_v28 = vld [vmem:[%s253_s3] ss:$0 sm:$0xff]  ;;  %s170_s5 = scalar_lea.vmem %s107_s30, 256  ;;  %p175_p11 = scmp.lt.s32.totalorder %s107_s30, %s107_s30 }
  0x1f   :  { %54 = vadd.xlane.f32.xlu0 %v50_v3  ;;  %v61_v6 = vmul.f32 %v50_v3, %v50_v3  ;;  %p171_p10 = scmp.ne.s32.totalorder %s107_s30, %s170_s5  ;;  %p176_p12 = scmp.lt.s32.totalorder %s170_s5, %s170_s5 }
  0x20   :  { %v62_v7 = vmul.f32 %v51_v5, %v51_v5 }
  0x21   :  { %63 = vadd.xlane.f32.xlu1 %v61_v6  ;;  %p177_p13 = por %p176_p12, %p175_p11 }
  0x23   :  { %56 = vadd.xlane.f32.xlu0 %v51_v5  ;;  %p178_p0 = pnand %p177_p13, %p171_p10 }
  0x25   :  { %65 = vadd.xlane.f32.xlu1 %v62_v7 }
  0xa8   :  { %v55_v8 = vpop.xlane.xlu0 %54 }
  0xa9   :  { %v59_v9 = vmul.f32 0.0078125, %v55_v8 }
  0xaa   :  { %v64_v10 = vpop.xlane.xlu1 %63 }
  0xab   :  { %v69_v11 = vmul.f32 %v59_v9, %v59_v9  ;;  %v67_v12 = vmul.f32 0.0078125, %v64_v10  ;;  %v75_v24 = vsub.f32 %v50_v3, %v59_v9 }
  0xac   :  { %v57_v13 = vpop.xlane.xlu0 %56 }
  0xad   :  { %v71_v14 = vsub.f32 %v67_v12, %v69_v11  ;;  %v60_v15 = vmul.f32 0.0078125, %v57_v13 }
  0xae   :  { %v66_v16 = vpop.xlane.xlu1 %65 }
  0xaf   :  { %v73_v17 = vmax.f32 %v71_v14, 0.0  ;;  %v70_v18 = vmul.f32 %v60_v15, %v60_v15  ;;  %v68_v19 = vmul.f32 0.0078125, %v66_v16  ;;  %v76_v29 = vsub.f32 %v51_v5, %v60_v15 }
  0xb1   :  { %v77_v20 = vadd.f32 1e-05, %v73_v17  ;;  %v72_v21 = vsub.f32 %v68_v19, %v70_v18 }
  0xb3   :  { %126 = vrsqrt.f32 %v77_v20  ;;  %v74_v22 = vmax.f32 %v72_v21, 0.0 }
  0xb5   :  { %v78_v23 = vadd.f32 1e-05, %v74_v22 }
  0xb7   :  { %128 = vrsqrt.f32 %v78_v23 }
  0xc0   :  { %v127_v25 = vpop.eup %126 }
  0xc1   :  { %v81_v27 = vmul.f32 %v127_v25, %v75_v24 }
  0xc3   :  { %v89_v30 = vmul.f32 %v119_v26, %v81_v27 }
  0xc4   :  { %v129_v31 = vpop.eup %128 }
  0xc5   :  { %v82_v32 = vmul.f32 %v129_v31, %v76_v29  ;;  %v97_v33 = vadd.f32 %v120_v28, %v89_v30 }
  0xc7   :  { %v90_v34 = vmul.f32 %v119_v26, %v82_v32  ;;  %99 = vst [vmem:[#allocation7] sm:$0xff] %v97_v33 }
  0xc9   :  { %v98_v35 = vadd.f32 %v120_v28, %v90_v34 }
  0xcb   :  { %100 = vst [vmem:[#allocation7 + $0x8] sm:$0xff] %v98_v35 }
  0xcc   :  { %181 = shalt.err (!%p178_p0)
}
  0xcd   :  { %112 = dma.vmem_to_hbm [thread:$0]  %s107_s30, 256, %s254_s4, [#allocation4], %s197_s18, %s197_s18, %s198_s19  }
  0xce   :  { %194 = dma.done.wait [#allocation4], 256  }
  0xcf   :  { %195 = vsyncadd [#allocation4], 4294967040 }
  0xd0   :  { %116 = vsyncpa [#allocation3], 1 }
  0xd1   :  { %117 = vsyncpa [#allocation6], 1 }
  0xd2   :  { %118 = vsyncpa [#allocation4], 1 }

</bundles_post_ra>
